<compile_context>
chip_gen: v7x
topology: tpu7x:2x2x1
jax: 0.10.0
libtpu: 0.0.40
codegen_flags: <defaults>
</compile_context>

<pallas_src>
import functools

import jax
import jax.numpy as jnp
from jax import lax
from jax.experimental import pallas as pl
from jax.experimental.pallas import tpu as pltpu

BN_EPS = 1e-5
_VMEM_LIMIT = 32 * 1024 * 1024        # <= v7x scoped default; harmless on v5e/v6e
_FUSED_BYTES_MAX = 4 * 1024 * 1024    # f32 footprint cap for the fused (resident) path


# ---------------------------------------------------------------------------
# Tiling helpers
# ---------------------------------------------------------------------------
def _fold_factor(c, hw, itemsize):
    """Power-of-2 factor S so each sample is viewed as (C*S, HW/S), filling the
    native sublane tile (8 rows f32 / 16 rows bf16) when C is small."""
    target = {4: 8, 2: 16, 1: 32}.get(itemsize, 8)
    s = 1
    while c * s < target and hw % (2 * s) == 0:
        s *= 2
    return s


def _pick_tile(hwf, cf, itemsize, max_block_bytes=4 * 1024 * 1024, max_lanes=4096):
    """Largest multiple-of-128 divisor of hwf with cf*tile*itemsize bounded.
    Falls back to the full extent when hwf isn't a multiple of 128 (the (8,128)
    rule then requires a full-dim block)."""
    if hwf % 128 != 0:
        return hwf
    cf_pad = -(-cf // 8) * 8
    cap = max(128, min(max_lanes, max_block_bytes // (cf_pad * itemsize)))
    cap = max(128, (cap // 128) * 128)
    best = 128
    t = 128
    while t <= min(hwf, cap):
        if hwf % t == 0:
            best = t
        t += 128
    return best


# ---------------------------------------------------------------------------
# Kernels
# ---------------------------------------------------------------------------
def _nam_fused_kernel(x_ref, gamma_ref, beta_ref, o_ref, *, inv_count):
    """Single-pass NAM for VMEM-resident inputs: 1 HBM read + 1 HBM write."""
    x = x_ref[...].astype(jnp.float32)                                # (N, C, HW)
    # True two-pass variance on the resident copy (no E[x^2]-mean^2 cancellation).
    mean = jnp.sum(jnp.sum(x, axis=2, keepdims=True), axis=0,
                   keepdims=True) * inv_count                         # (1, C, 1)
    d = x - mean
    var = jnp.sum(jnp.sum(d * d, axis=2, keepdims=True), axis=0,
                  keepdims=True) * inv_count                          # (1, C, 1)
    inv_std = lax.rsqrt(var + BN_EPS)
    gamma = gamma_ref[...]                                            # (1, C, 1)
    beta = beta_ref[...]
    abs_g = jnp.abs(gamma)
    w = abs_g / jnp.sum(abs_g)            # NaN if all gamma == 0 (matches torch)
    # sigmoid(z) = 0.5*tanh(z/2) + 0.5; fold the 1/2 into the affine so the
    # per-element cost is one fused mul-add + a single EUP tanh.
    a = 0.5 * w * gamma * inv_std
    b = 0.5 * w * (beta - gamma * mean * inv_std)
    o_ref[...] = (0.5 * jnp.tanh(a * x + b) + 0.5).astype(o_ref.dtype)


def _nam_stats_kernel(x_ref, sum_ref, sq_ref):
    """Pass 1: per-sample, per-(folded-)channel sum / sum-of-squares accumulated
    across spatial tiles into resident (1, Cf, 1) output blocks."""
    j = pl.program_id(1)

    @pl.when(j == 0)
    def _():
        sum_ref[...] = jnp.zeros_like(sum_ref)
        sq_ref[...] = jnp.zeros_like(sq_ref)

    x = x_ref[...].astype(jnp.float32)                        # (1, Cf, tile)
    sum_ref[...] += jnp.sum(x, axis=2, keepdims=True)         # (1, Cf, 1)
    sq_ref[...] += jnp.sum(x * x, axis=2, keepdims=True)


def _nam_apply_kernel(x_ref, a_ref, b_ref, o_ref):
    """Pass 2: out = sigmoid(a*x + b) via 0.5*tanh(.)+0.5 (a, b pre-halved)."""
    x = x_ref[...]                                            # (1, Cf, tile)
    z = a_ref[...] * x + b_ref[...]                           # lane-broadcast a/b
    o_ref[...] = (0.5 * jnp.tanh(z) + 0.5).astype(o_ref.dtype)


# ---------------------------------------------------------------------------
# Wrappers
# ---------------------------------------------------------------------------
def _nam_fused(x_nchw, gamma, beta):
    n, c, h, w = x_nchw.shape
    hw = h * w
    x3 = x_nchw.reshape(n, c, hw)
    gamma3 = gamma.reshape(1, c, 1)
    beta3 = beta.reshape(1, c, 1)
    inv_count = 1.0 / float(n * hw)

    out3 = pl.pallas_call(
        functools.partial(_nam_fused_kernel, inv_count=inv_count),
        out_shape=jax.ShapeDtypeStruct((n, c, hw), x_nchw.dtype),
        grid_spec=pltpu.PrefetchScalarGridSpec(
            num_scalar_prefetch=0,
            grid=(1,),
            in_specs=[
                pl.BlockSpec((n, c, hw), lambda i: (0, 0, 0)),
                pl.BlockSpec((1, c, 1), lambda i: (0, 0, 0)),
                pl.BlockSpec((1, c, 1), lambda i: (0, 0, 0)),
            ],
            out_specs=pl.BlockSpec((n, c, hw), lambda i: (0, 0, 0))),
        compiler_params=pltpu.CompilerParams(
            dimension_semantics=("arbitrary",),
            vmem_limit_bytes=_VMEM_LIMIT),
    )(x3, gamma3, beta3)
    return out3.reshape(n, c, h, w)


def _nam_two_pass(x_nchw, gamma, beta):
    n, c, h, w = x_nchw.shape
    hw = h * w
    dtype = x_nchw.dtype
    itemsize = jnp.dtype(dtype).itemsize

    # Fold spatial rows into the sublane (channel) axis when C is skinny.
    s = _fold_factor(c, hw, itemsize)
    cf, hwf = c * s, hw // s
    x3 = x_nchw.reshape(n, cf, hwf)            # free view, spatial stays lane-major

    tile = _pick_tile(hwf, cf, itemsize)
    num_tiles = hwf // tile
    inv_count = 1.0 / float(n * hw)

    # ---- Pass 1: per-sample partial stats (batch axis parallel for megacore) ----
    psum, psq = pl.pallas_call(
        _nam_stats_kernel,
        out_shape=(jax.ShapeDtypeStruct((n, cf, 1), jnp.float32),
                   jax.ShapeDtypeStruct((n, cf, 1), jnp.float32)),
        grid_spec=pltpu.PrefetchScalarGridSpec(
            num_scalar_prefetch=0,
            grid=(n, num_tiles),
            in_specs=[pl.BlockSpec((1, cf, tile), lambda i, j: (i, 0, j))],
            out_specs=[pl.BlockSpec((1, cf, 1), lambda i, j: (i, 0, 0)),
                       pl.BlockSpec((1, cf, 1), lambda i, j: (i, 0, 0))]),
        compiler_params=pltpu.CompilerParams(
            dimension_semantics=("parallel", "arbitrary"),
            vmem_limit_bytes=_VMEM_LIMIT),
    )(x3)

    # ---- Tiny C-sized epilogue in plain JAX: fold BN + |gamma| weights into
    #      one per-channel affine; pre-halve for the tanh-based sigmoid. ----
    sum_c = jnp.sum(psum.reshape(n, c, s), axis=(0, 2))
    sq_c = jnp.sum(psq.reshape(n, c, s), axis=(0, 2))
    mean = sum_c * inv_count
    # Biased batch variance (PyTorch training-mode normalization), clamped >= 0.
    var = jnp.maximum(sq_c * inv_count - mean * mean, 0.0)
    inv_std = lax.rsqrt(var + BN_EPS)
    abs_g = jnp.abs(gamma)
    w_bn = abs_g / jnp.sum(abs_g)          # NaN if all gamma == 0 (matches torch)
    a = 0.5 * w_bn * gamma * inv_std
    b = 0.5 * w_bn * (beta - gamma * mean * inv_std)
    a3 = jnp.repeat(a, s).reshape(1, cf, 1).astype(jnp.float32)
    b3 = jnp.repeat(b, s).reshape(1, cf, 1).astype(jnp.float32)

    # ---- Pass 2: out = sigmoid(a*x + b), tiled & fully parallel ----
    out3 = pl.pallas_call(
        _nam_apply_kernel,
        out_shape=jax.ShapeDtypeStruct((n, cf, hwf), dtype),
        grid_spec=pltpu.PrefetchScalarGridSpec(
            num_scalar_prefetch=0,
            grid=(n, num_tiles),
            in_specs=[pl.BlockSpec((1, cf, tile), lambda i, j: (i, 0, j)),
                      pl.BlockSpec((1, cf, 1), lambda i, j: (0, 0, 0)),
                      pl.BlockSpec((1, cf, 1), lambda i, j: (0, 0, 0))],
            out_specs=pl.BlockSpec((1, cf, tile), lambda i, j: (i, 0, j))),
        compiler_params=pltpu.CompilerParams(
            dimension_semantics=("parallel", "parallel"),
            vmem_limit_bytes=_VMEM_LIMIT),
    )(x3, a3, b3)

    return out3.reshape(n, c, h, w)


def nam_forward(x_nchw, gamma, beta, *, force_fused=None):
    """NAM forward. x_nchw: (N, C, H, W); gamma/beta: (C,). Returns NCHW output."""
    n, c, h, w = x_nchw.shape
    hw = h * w
    gamma = jnp.asarray(gamma, jnp.float32).reshape(c)
    beta = jnp.asarray(beta, jnp.float32).reshape(c)

    c_pad8 = -(-c // 8) * 8
    fused_f32_bytes = n * c_pad8 * hw * 4  # padded f32 footprint of x in VMEM
    use_fused = fused_f32_bytes <= _FUSED_BYTES_MAX if force_fused is None else force_fused

    if use_fused:
        return _nam_fused(x_nchw, gamma, beta)
    return _nam_two_pass(x_nchw, gamma, beta)


# ---------------------------------------------------------------------------
# Reference + self-test
# ---------------------------------------------------------------------------
def _nam_reference(x, gamma, beta):
    """Pure-JAX reference of the PyTorch module (training-mode BN)."""
    mean = jnp.mean(x, axis=(0, 2, 3), keepdims=True)
    var = jnp.mean((x - mean) ** 2, axis=(0, 2, 3), keepdims=True)
    g = gamma.reshape(1, -1, 1, 1)
    b = beta.reshape(1, -1, 1, 1)
    y = g * (x - mean) * lax.rsqrt(var + BN_EPS) + b
    w_bn = jnp.abs(gamma) / jnp.sum(jnp.abs(gamma))
    return jax.nn.sigmoid(w_bn.reshape(1, -1, 1, 1) * y)


if __name__ == "__main__":
    # Small shapes consistent with the module: batch=2, channels=4, spatial=16.
    N, C, H, W = 2, 4, 16, 16

    key = jax.random.PRNGKey(0)
    kx, kg, kb = jax.random.split(key, 3)

    x = jax.random.normal(kx, (N, C, H, W), dtype=jnp.float32)
    gamma = 1.0 + 0.1 * jax.random.normal(kg, (C,), dtype=jnp.float32)
    beta = 0.1 * jax.random.normal(kb, (C,), dtype=jnp.float32)

    ref = _nam_reference(x, gamma, beta)

    # Exercise both code paths (fused single-pass and tiled two-pass).
    out_fused = nam_forward(x, gamma, beta, force_fused=True)
    jax.block_until_ready(out_fused)
    out_tiled = nam_forward(x, gamma, beta, force_fused=False)
    jax.block_until_ready(out_tiled)

    for name, out in (("fused", out_fused), ("tiled", out_tiled)):
        assert out.shape == (N, C, H, W), (name, out.shape)
        assert out.dtype == x.dtype, (name, out.dtype)
        max_err = float(jnp.max(jnp.abs(out - ref)))
        assert max_err < 1e-4, f"{name}: max abs error vs reference: {max_err}"

    print("KERNEL_OK")
</pallas_src>

<mosaic_0001>
module attributes {stable_mosaic.version = 11 : i64} {
  func.func @_nam_fused_kernel(%arg0: i32, %arg1: memref<2x4x256xf32, #tpu.memory_space<vmem>>, %arg2: memref<1x4x1xf32, #tpu.memory_space<vmem>>, %arg3: memref<1x4x1xf32, #tpu.memory_space<vmem>>, %arg4: memref<2x4x256xf32, #tpu.memory_space<vmem>>) attributes {dimension_semantics = [#tpu.dimension_semantics<arbitrary>], iteration_bounds = array<i64: 1>, scalar_prefetch = 0 : i64, scratch_operands = 0 : i64, tpu.core_type = #tpu.core_type<tc>, window_params = [{pipeline_mode = #tpu.pipeline_mode<synchronous>, transform_indices = @transform_0, window_bounds = array<i64: 2, 4, 256>}, {pipeline_mode = #tpu.pipeline_mode<synchronous>, transform_indices = @transform_1, window_bounds = array<i64: 1, 4, 1>}, {pipeline_mode = #tpu.pipeline_mode<synchronous>, transform_indices = @transform_2, window_bounds = array<i64: 1, 4, 1>}, {pipeline_mode = #tpu.pipeline_mode<synchronous>, transform_indices = @transform_3, window_bounds = array<i64: 2, 4, 256>}]} {
    %c0 = arith.constant 0 : index
    %c0_0 = arith.constant 0 : index
    %c0_1 = arith.constant 0 : index
    %0 = vector.load %arg1[%c0, %c0_0, %c0_1] : memref<2x4x256xf32, #tpu.memory_space<vmem>>, vector<2x4x256xf32>
    %cst = arith.constant dense<0.000000e+00> : vector<2x4xf32>
    %1 = vector.multi_reduction <add>, %0, %cst [2] : vector<2x4x256xf32> to vector<2x4xf32>
    %2 = vector.shape_cast %1 : vector<2x4xf32> to vector<2x4x1xf32>
    %cst_2 = arith.constant dense<0.000000e+00> : vector<4x1xf32>
    %3 = vector.multi_reduction <add>, %2, %cst_2 [0] : vector<2x4x1xf32> to vector<4x1xf32>
    %4 = vector.shape_cast %3 : vector<4x1xf32> to vector<1x4x1xf32>
    %cst_3 = arith.constant 0.001953125 : f32
    %5 = vector.broadcast %cst_3 : f32 to vector<1x4x1xf32>
    %6 = arith.mulf %4, %5 : vector<1x4x1xf32>
    %7 = vector.broadcast %6 : vector<1x4x1xf32> to vector<2x4x256xf32>
    %8 = arith.subf %0, %7 : vector<2x4x256xf32>
    %9 = arith.mulf %8, %8 : vector<2x4x256xf32>
    %cst_4 = arith.constant dense<0.000000e+00> : vector<2x4xf32>
    %10 = vector.multi_reduction <add>, %9, %cst_4 [2] : vector<2x4x256xf32> to vector<2x4xf32>
    %11 = vector.shape_cast %10 : vector<2x4xf32> to vector<2x4x1xf32>
    %cst_5 = arith.constant dense<0.000000e+00> : vector<4x1xf32>
    %12 = vector.multi_reduction <add>, %11, %cst_5 [0] : vector<2x4x1xf32> to vector<4x1xf32>
    %13 = vector.shape_cast %12 : vector<4x1xf32> to vector<1x4x1xf32>
    %cst_6 = arith.constant 0.001953125 : f32
    %14 = vector.broadcast %cst_6 : f32 to vector<1x4x1xf32>
    %15 = arith.mulf %13, %14 : vector<1x4x1xf32>
    %cst_7 = arith.constant 9.99999974E-6 : f32
    %16 = vector.broadcast %cst_7 : f32 to vector<1x4x1xf32>
    %17 = arith.addf %15, %16 : vector<1x4x1xf32>
    %18 = math.rsqrt %17 : vector<1x4x1xf32>
    %c0_8 = arith.constant 0 : index
    %c0_9 = arith.constant 0 : index
    %c0_10 = arith.constant 0 : index
    %19 = vector.load %arg2[%c0_8, %c0_9, %c0_10] : memref<1x4x1xf32, #tpu.memory_space<vmem>>, vector<1x4x1xf32>
    %c0_11 = arith.constant 0 : index
    %c0_12 = arith.constant 0 : index
    %c0_13 = arith.constant 0 : index
    %20 = vector.load %arg3[%c0_11, %c0_12, %c0_13] : memref<1x4x1xf32, #tpu.memory_space<vmem>>, vector<1x4x1xf32>
    %21 = math.absf %19 : vector<1x4x1xf32>
    %22 = vector.shape_cast %21 : vector<1x4x1xf32> to vector<1x1x4x1xf32>
    %cst_14 = arith.constant dense<0.000000e+00> : vector<1xf32>
    %23 = vector.multi_reduction <add>, %22, %cst_14 [1, 2, 3] : vector<1x1x4x1xf32> to vector<1xf32>
    %24 = vector.shape_cast %23 : vector<1xf32> to vector<1x1x1x1xf32>
    %25 = vector.extract %24[0, 0, 0, 0] : f32 from vector<1x1x1x1xf32>
    %26 = vector.broadcast %25 : f32 to vector<1x4x1xf32>
    %27 = arith.divf %21, %26 : vector<1x4x1xf32>
    %cst_15 = arith.constant 5.000000e-01 : f32
    %28 = vector.broadcast %cst_15 : f32 to vector<1x4x1xf32>
    %29 = arith.mulf %28, %27 : vector<1x4x1xf32>
    %30 = arith.mulf %29, %19 : vector<1x4x1xf32>
    %31 = arith.mulf %30, %18 : vector<1x4x1xf32>
    %cst_16 = arith.constant 5.000000e-01 : f32
    %32 = vector.broadcast %cst_16 : f32 to vector<1x4x1xf32>
    %33 = arith.mulf %32, %27 : vector<1x4x1xf32>
    %34 = arith.mulf %19, %6 : vector<1x4x1xf32>
    %35 = arith.mulf %34, %18 : vector<1x4x1xf32>
    %36 = arith.subf %20, %35 : vector<1x4x1xf32>
    %37 = arith.mulf %33, %36 : vector<1x4x1xf32>
    %38 = vector.broadcast %31 : vector<1x4x1xf32> to vector<2x4x256xf32>
    %39 = arith.mulf %38, %0 : vector<2x4x256xf32>
    %40 = vector.broadcast %37 : vector<1x4x1xf32> to vector<2x4x256xf32>
    %41 = arith.addf %39, %40 : vector<2x4x256xf32>
    %42 = math.tanh %41 : vector<2x4x256xf32>
    %cst_17 = arith.constant 5.000000e-01 : f32
    %43 = vector.broadcast %cst_17 : f32 to vector<2x4x256xf32>
    %44 = arith.mulf %43, %42 : vector<2x4x256xf32>
    %cst_18 = arith.constant 5.000000e-01 : f32
    %45 = vector.broadcast %cst_18 : f32 to vector<2x4x256xf32>
    %46 = arith.addf %44, %45 : vector<2x4x256xf32>
    %c0_19 = arith.constant 0 : index
    %c0_20 = arith.constant 0 : index
    %c0_21 = arith.constant 0 : index
    %47 = vector.load %arg4[%c0_19, %c0_20, %c0_21] : memref<2x4x256xf32, #tpu.memory_space<vmem>>, vector<2x4x256xf32>
    tpu.vector_store %arg4[%c0_19, %c0_20, %c0_21], %46 {strides = array<i32>} : memref<2x4x256xf32, #tpu.memory_space<vmem>>, vector<2x4x256xf32>,
    return
  }
  func.func @transform_0(%arg0: i32) -> (i32, i32, i32) {
    %c0_i32 = arith.constant 0 : i32
    %c0_i32_0 = arith.constant 0 : i32
    %c0_i32_1 = arith.constant 0 : i32
    %c0_i32_2 = arith.constant 0 : i32
    return %c0_i32, %c0_i32_0, %c0_i32_1 : i32, i32, i32
  }
  func.func @transform_1(%arg0: i32) -> (i32, i32, i32) {
    %c0_i32 = arith.constant 0 : i32
    %c0_i32_0 = arith.constant 0 : i32
    %c0_i32_1 = arith.constant 0 : i32
    %c0_i32_2 = arith.constant 0 : i32
    return %c0_i32, %c0_i32_0, %c0_i32_1 : i32, i32, i32
  }
  func.func @transform_2(%arg0: i32) -> (i32, i32, i32) {
    %c0_i32 = arith.constant 0 : i32
    %c0_i32_0 = arith.constant 0 : i32
    %c0_i32_1 = arith.constant 0 : i32
    %c0_i32_2 = arith.constant 0 : i32
    return %c0_i32, %c0_i32_0, %c0_i32_1 : i32, i32, i32
  }
  func.func @transform_3(%arg0: i32) -> (i32, i32, i32) {
    %c0_i32 = arith.constant 0 : i32
    %c0_i32_0 = arith.constant 0 : i32
    %c0_i32_1 = arith.constant 0 : i32
    %c0_i32_2 = arith.constant 0 : i32
    return %c0_i32, %c0_i32_0, %c0_i32_1 : i32, i32, i32
  }
}

</mosaic_0001>

<bundles_post_ra>
// kernel: tpu_custom_call.1
= control target key start
LH: loop header
LB: loop body
LE: loop exit
PB: predicated region body
PF: predicated region fallthrough
CT: control target
= control target key end

     0   :  { %8 = vsyncpa [#allocation3], 0  ;;  %s341_s0 = inlined_call_operand.hbm [shape: f32[2,4,256], index: 0, kind: input, shape index: {}]   ;;  %s342_s1 = inlined_call_operand.vmem [shape: f32[1,4,1], index: 1, kind: input, shape index: {}]   ;;  %s343_s2 = inlined_call_operand.vmem [shape: f32[1,4,1], index: 2, kind: input, shape index: {}]   ;;  %s344_s3 = inlined_call_operand.hbm [shape: f32[2,4,256], index: 3, kind: output, shape index: {}]  }
   0x1   :  { %9 = vsyncpa [#allocation4], 0  ;;  %s240_s12 = smov [#allocation2]   ;;  %s192_s16 = scalar_lea.hbm %s341_s0, 256 }
   0x2   :  { %s15_s13 = sshll.u32 %s240_s12, 4  ;;  %p193_p0 = scmp.ne.s32.totalorder %s341_s0, %s192_s16  ;;  %s16_s13 = int_to_ptr.vmem [resolvable:$true] %s15_s13 }
   0x3   :  { %p196_p1 = scmp.lt.u32.totalorder %s192_s16, %s341_s0 }
   0x5   :  { %p198_p2 = pnand %p196_p1, %p193_p0 }
   0x7   :  { %201 = shalt.err (!%p198_p2)
}
   0x8   :  { %s202_s21 = scalar_lea.vmem %s16_s13, 256  ;;  %p207_p4 = scmp.lt.s32.totalorder %s16_s13, %s16_s13 }
   0x9   :  { %p203_p3 = scmp.ne.s32.totalorder %s16_s13, %s202_s21  ;;  %p208_p5 = scmp.lt.s32.totalorder %s202_s21, %s202_s21 }
   0xb   :  { %p209_p6 = por %p208_p5, %p207_p4 }
   0xd   :  { %p210_p7 = pnand %p209_p6, %p203_p3 }
   0xf   :  { %213 = shalt.err (!%p210_p7)
}
  0x10   :  { %s241_s22 = smov 128   ;;  %s242_s23 = smov 8  }
  0x11   :  { %21 = dma.hbm_to_vmem [thread:$0]  %s341_s0, 256, %s16_s13, [#allocation3], %s241_s22, %s241_s22, %s242_s23  }
  0x12   :  { %236 = dma.done.wait [#allocation3], 256  }
  0x13   :  { %237 = vsyncadd [#allocation3], 4294967040  ;;  %vm37_vm0 = vcmask 1043456   ;;  %v281_v0 = vld [vmem:[#allocation2] sm:$0xff]  ;;  %v283_v1 = vld [vmem:[#allocation2 + $0x8] sm:$0xff]  ;;  %vm90_vm1 = vcmask 3072   ;;  %v56_v15 = vlaneseq }
  0x14   :  { %v288_v2 = vld [vmem:[%s342_s1] sm:$0xf]  ;;  %v292_v3 = vcombine.high %v281_v0, %v281_v0  ;;  %v38_v4 = vsel %vm37_vm0, %v281_v0, 0.0  ;;  %v298_v5 = vcombine.high %v283_v1, %v283_v1  ;;  %v43_v8 = vsel %vm37_vm0, %v283_v1, 0.0 }
  0x15   :  { %v89_v6 = vand.u32 2147483647, %v288_v2  ;;  %v243_v13 = vmov 839922192   ;;  %v57_v20 = vshrl.u32 %v56_v15, 7  ;;  %v244_v45 = vmov 0  }
  0x16   :  { %v39_v7 = vsel %vm37_vm0, %v292_v3, 0.0  ;;  %v44_v9 = vsel %vm37_vm0, %v298_v5, 0.0  ;;  %v54_v14 = vunpack.c.l.s4 %v243_v13  ;;  %176 = vset.pattern.permute.xlu1 %v244_v45  ;;  %177 = vset.pattern.permute.xlu0 %v244_v45  ;;  %v88_v60 = vld [vmem:[%s343_s2] sm:$0xf]  ;;  %s245_s2 = smov [#allocation5]  }
  0x17   :  { %v40_v10 = vadd.f32 %v39_v7, %v38_v4  ;;  %v91_v11 = vsel %vm90_vm1, %v89_v6, 0.0  ;;  %v45_v12 = vadd.f32 %v44_v9, %v43_v8  ;;  %s156_s29 = sshll.u32 %s245_s2, 4  ;;  %s157_s29 = int_to_ptr.vmem [resolvable:$true] %s156_s29 }
  0x18   :  { %92 = vadd.xlane.f32.xlu1 %v91_v11  ;;  %v55_v19 = vunpack.c.0.s8 %v54_v14  ;;  %s214_s30 = scalar_lea.vmem %s157_s29, 256  ;;  %p219_p9 = scmp.lt.s32.totalorder %s157_s29, %s157_s29 }
  0x19   :  { %41 = vadd.xlane.f32.xlu0 %v40_v10  ;;  %p215_p8 = scmp.ne.s32.totalorder %s157_s29, %s214_s30  ;;  %p220_p10 = scmp.lt.s32.totalorder %s214_s30, %s214_s30 }
  0x1a   :  { %v58_v26 = vsub.s32 %v55_v19, %v57_v20 }
  0x1b   :  { %p221_p11 = por %p220_p10, %p219_p9 }
  0x1d   :  { %46 = vadd.xlane.f32.xlu0 %v45_v12  ;;  %p222_p12 = pnand %p221_p11, %p215_p8 }
  0xa5   :  { %v93_v16 = vpop.xlane.xlu1 %92 }
  0xa6   :  { %v42_v17 = vpop.xlane.xlu0 %41  ;;  %v94_v18 = vrot.slane %v93_v16, 4 }
  0xa7   :  { %v48_v24 = vsel %vm37_vm0, %v42_v17, 0.0 }
  0xa8   :  { %v95_v21 = vadd.f32 %v94_v18, %v93_v16 }
  0xaa   :  { %v47_v22 = vpop.xlane.xlu0 %46  ;;  %v96_v23 = vrot.slane %v95_v21, 2 }
  0xab   :  { %v49_v25 = vsel %vm37_vm0, %v47_v22, 0.0 }
  0xac   :  { %v50_v27 = vadd.f32 %v49_v25, %v48_v24  ;;  %v97_v28 = vadd.f32 %v96_v23, %v95_v21 }
  0xae   :  { %v51_v29 = vmul.f32 0.001953125, %v50_v27  ;;  %v98_v30 = vrot.slane %v97_v28, 1 }
  0xb0   :  { %v59_v31 = vrot.slane %v51_v29, %v58_v26  ;;  %v99_v32 = vadd.f32 %v98_v30, %v97_v28  ;;  %v107_v57 = vmul.f32 %v288_v2, %v51_v29 }
  0xb2   :  { %v62_v33 = vsub.f32 %v283_v1, %v59_v31  ;;  %v61_v34 = vsub.f32 %v281_v0, %v59_v31  ;;  %168 = vpush %v99_v32 }
  0xb4   :  { %v64_v35 = vmul.f32 %v62_v33, %v62_v33  ;;  %v63_v36 = vmul.f32 %v61_v34, %v61_v34 }
  0xb6   :  { %v68_v37 = vcombine.high %v64_v35, %v64_v35  ;;  %v67_v38 = vcombine.high %v63_v36, %v63_v36  ;;  %v76_v39 = vsel %vm37_vm0, %v64_v35, 0.0  ;;  %v71_v41 = vsel %vm37_vm0, %v63_v36, 0.0 }
  0xb8   :  { %v77_v40 = vsel %vm37_vm0, %v68_v37, 0.0  ;;  %v72_v42 = vsel %vm37_vm0, %v67_v38, 0.0 }
  0xb9   :  { %v78_v43 = vadd.f32 %v77_v40, %v76_v39  ;;  %v73_v44 = vadd.f32 %v72_v42, %v71_v41 }
  0xbb   :  { %79 = vadd.xlane.f32.xlu0 %v78_v43  ;;  %74 = vadd.xlane.f32.xlu1 %v73_v44 }
  0xe3   :  { %s169_s0 = spop %168 }
  0xe4   :  { %v101_v46 = vstv %s169_s0 }
  0xe5   :  { %180 = vrcp.f32 %v101_v46 }
  0xef   :  { %v181_v53 = vpop.eup %180 }
  0xf0   :  { %v103_v55 = vmul.f32 %v181_v53, %v89_v6 }
  0xf2   :  { %v104_v56 = vmul.f32 0.5, %v103_v55 }
  0xf4   :  { %v105_v58 = vmul.f32 %v104_v56, %v288_v2 }
 0x148   :  { %v80_v47 = vpop.xlane.xlu0 %79  ;;  %v75_v48 = vpop.xlane.xlu1 %74 }
 0x149   :  { %v82_v49 = vsel %vm37_vm0, %v80_v47, 0.0  ;;  %v81_v50 = vsel %vm37_vm0, %v75_v48, 0.0 }
 0x14a   :  { %v83_v51 = vadd.f32 %v82_v49, %v81_v50 }
 0x14c   :  { %v84_v52 = vmul.f32 0.001953125, %v83_v51 }
 0x14e   :  { %v85_v54 = vadd.f32 1e-05, %v84_v52 }
 0x150   :  { %182 = vrsqrt.f32 %v85_v54 }
 0x15a   :  { %v183_v59 = vpop.eup %182 }
 0x15b   :  { %v106_v61 = vmul.f32 %v183_v59, %v105_v58  ;;  %v108_v62 = vmul.f32 %v183_v59, %v107_v57 }
 0x15d   :  { %113 = vperm.xlu1 %176, %v106_v61   ;;  %v109_v63 = vsub.f32 %v88_v60, %v108_v62 }
 0x15f   :  { %v110_v4 = vmul.f32 %v109_v63, %v104_v56 }
 0x161   :  { %122 = vperm.xlu0 %177, %v110_v4  }
 0x1dc   :  { %v114_v7 = vpop.permute.xlu1 %113 }
 0x1dd   :  { %v116_v8 = vmul.f32 %v114_v7, %v281_v0  ;;  %v117_v6 = vmul.f32 %v114_v7, %v292_v3  ;;  %v118_v9 = vmul.f32 %v114_v7, %v283_v1  ;;  %v119_v2 = vmul.f32 %v114_v7, %v298_v5 }
 0x1e0   :  { %v123_v10 = vpop.permute.xlu0 %122 }
 0x1e1   :  { %v125_v11 = vadd.f32 %v123_v10, %v116_v8  ;;  %v126_v12 = vadd.f32 %v123_v10, %v117_v6  ;;  %v127_v13 = vadd.f32 %v123_v10, %v118_v9  ;;  %v128_v14 = vadd.f32 %v123_v10, %v119_v2 }
 0x1e3   :  { %184 = vtanh.f32 %v125_v11 }
 0x1e4   :  { %186 = vtanh.f32 %v126_v12 }
 0x1e5   :  { %188 = vtanh.f32 %v127_v13 }
 0x1e6   :  { %190 = vtanh.f32 %v128_v14 }
 0x1ed   :  { %v185_v15 = vpop.eup %184 }
 0x1ee   :  { %v187_v16 = vpop.eup %186  ;;  %v133_v17 = vmul.f32 0.5, %v185_v15 }
 0x1ef   :  { %v189_v18 = vpop.eup %188  ;;  %v134_v0 = vmul.f32 0.5, %v187_v16 }
 0x1f0   :  { %v191_v19 = vpop.eup %190  ;;  %v135_v3 = vmul.f32 0.5, %v189_v18  ;;  %v137_v20 = vadd.f32 0.5, %v133_v17 }
 0x1f1   :  { %v136_v1 = vmul.f32 0.5, %v191_v19  ;;  %v138_v21 = vadd.f32 0.5, %v134_v0 }
 0x1f2   :  { %v139_v5 = vadd.f32 0.5, %v135_v3 }
 0x1f3   :  { %v140_v22 = vadd.f32 0.5, %v136_v1  ;;  %v145_v23 = vcombine.low %v137_v20, %v138_v21 }
 0x1f5   :  { %v146_v24 = vcombine.low %v139_v5, %v140_v22  ;;  %149 = vst [vmem:[#allocation5] sm:$0xff] %v145_v23 }
 0x1f7   :  { %150 = vst [vmem:[#allocation5 + $0x8] sm:$0xff] %v146_v24 }
 0x1f8   :  { %225 = shalt.err (!%p222_p12)
}
 0x1f9   :  { %s226_s6 = scalar_lea.hbm %s344_s3, 256 }
 0x1fa   :  { %p227_p13 = scmp.ne.s32.totalorder %s344_s3, %s226_s6  ;;  %p230_p0 = scmp.lt.u32.totalorder %s226_s6, %s344_s3 }
 0x1fc   :  { %p232_p1 = pnand %p230_p0, %p227_p13 }
 0x1fe   :  { %235 = shalt.err (!%p232_p1)
}
 0x1ff   :  { %162 = dma.vmem_to_hbm [thread:$0]  %s157_s29, 256, %s344_s3, [#allocation4], %s241_s22, %s241_s22, %s242_s23  }
 0x200   :  { %238 = dma.done.wait [#allocation4], 256  }
 0x201   :  { %239 = vsyncadd [#allocation4], 4294967040 }
 0x202   :  { %166 = vsyncpa [#allocation3], 1 }
 0x203   :  { %167 = vsyncpa [#allocation4], 1 }

</bundles_post_ra>
